<compile_context>
chip_gen: v6e
topology: v6e:2x2x1
jax: 0.10.0
libtpu: 0.0.40
codegen_flags: <defaults>
</compile_context>

<pallas_src>
import math
import functools

import jax
import jax.numpy as jnp
from jax.experimental import pallas as pl
from jax.experimental.pallas import tpu as pltpu


def _build_pe_table(dim: int, max_len: int = 5000) -> jnp.ndarray:
    """Deterministic sinusoidal table, shape (max_len, dim), float32."""
    assert dim % 2 == 0, "sin/cos positional encoding requires even dim"
    position = jnp.arange(0, max_len, dtype=jnp.float32)[:, None]          # (L, 1)
    div_term = jnp.exp(
        jnp.arange(0, dim, 2, dtype=jnp.float32) * -(math.log(10000.0) / dim)
    )                                                                       # (dim/2,)
    args = position * div_term                                              # (L, dim/2)
    pe = jnp.zeros((max_len, dim), dtype=jnp.float32)
    pe = pe.at[:, 0::2].set(jnp.sin(args))
    pe = pe.at[:, 1::2].set(jnp.cos(args))
    return pe


def _pos_enc_kernel(emb_ref, pe_ref, out_ref, *, scale, batch, dim):
    # emb_ref/out_ref: (ts, B*D) lane-dense; pe_ref: (ts, D) float32.
    pe = pe_ref[...]                                       # f32, one row per out row
    for b in range(batch):                                 # static unroll: free views
        sl = slice(b * dim, (b + 1) * dim)
        x = emb_ref[:, sl].astype(jnp.float32)
        out_ref[:, sl] = (x * scale + pe).astype(out_ref.dtype)


def _pos_enc_step_kernel(step_ref, emb_ref, pe_ref, out_ref, *, scale, batch, dim):
    # Decode path. pe_ref: (8, D) f32 block holding rows [8*(step//8), +8);
    # select the single row step % 8 and broadcast it over all positions/batch.
    row = step_ref[0] % 8
    pe = pe_ref[pl.ds(row, 1), :]                          # (1, D) float32
    for b in range(batch):
        sl = slice(b * dim, (b + 1) * dim)
        x = emb_ref[:, sl].astype(jnp.float32)
        out_ref[:, sl] = (x * scale + pe).astype(out_ref.dtype)


def positional_encoding(emb: jnp.ndarray, pe_table: jnp.ndarray,
                        dim: int, step=None) -> jnp.ndarray:
    """emb: (seq_len, batch, dim). pe_table: (max_len, dim) float32."""
    S, B, D = emb.shape
    assert D == dim and D % 2 == 0
    assert S <= pe_table.shape[0]
    scale = math.sqrt(dim)

    BD = B * D
    emb2 = emb.reshape(S, BD)                  # contiguous -> free, lane-dense view

    itemsize = jnp.dtype(emb.dtype).itemsize
    # Per-row streamed bytes: emb row (in emb dtype) + pe row (f32). in/out each
    # double-buffer a ts-row block, so total VMEM ~= 4 * target_bytes + slack.
    row_bytes = BD * itemsize + D * 4
    target_bytes = 4 * 1024 * 1024             # ~4 MiB blocks amortize per-step overhead
    ts = max(8, target_bytes // max(row_bytes, 1))
    if S >= 16:
        # Keep at least 2 grid blocks so the parallel axis feeds both v7x cores.
        ts = min(ts, max(8, S // 2))
    ts = min(ts, S)
    if ts >= 8:
        ts = (ts // 8) * 8                     # sublane-aligned tile

    grid = (pl.cdiv(S, ts),)

    if step is None:
        if ts % 8 == 0:
            # Row-blocks indexed straight out of the full f32 table: no wrapper
            # cast/slice of the 5000-row buffer, only S rows of pe ever move.
            pe_in = pe_table
        else:
            # Tiny S (< 8): block must equal full array dims -> cheap (S, D) slice.
            pe_in = pe_table[:S]
        num_prefetch = 0
        kernel = functools.partial(_pos_enc_kernel, scale=scale, batch=B, dim=D)
        in_specs = [
            pl.BlockSpec((ts, BD), lambda i: (i, 0)),
            pl.BlockSpec((ts, D), lambda i: (i, 0)),
        ]
        out_spec = pl.BlockSpec((ts, BD), lambda i: (i, 0))
        call_args = (emb2, pe_in)
        pe_rows = S
    else:
        # Stepwise decode: step goes in via scalar prefetch (no wrapper-side
        # dynamic_slice); pe block (8, D) keeps the (8,128) tiling rule happy
        # and the kernel picks row step % 8.
        num_prefetch = 1
        step_arr = jnp.asarray([step], dtype=jnp.int32)
        kernel = functools.partial(_pos_enc_step_kernel, scale=scale, batch=B, dim=D)
        in_specs = [
            pl.BlockSpec((ts, BD), lambda i, s: (i, 0)),
            pl.BlockSpec((8, D), lambda i, s: (s[0] // 8, 0)),
        ]
        out_spec = pl.BlockSpec((ts, BD), lambda i, s: (i, 0))
        call_args = (step_arr, emb2, pe_table)
        pe_rows = 8

    cost = pl.CostEstimate(
        flops=2 * S * BD,
        transcendentals=0,
        bytes_accessed=2 * S * BD * itemsize + pe_rows * D * 4,
    )

    out2 = pl.pallas_call(
        kernel,
        out_shape=jax.ShapeDtypeStruct((S, BD), emb.dtype),
        grid_spec=pltpu.PrefetchScalarGridSpec(
            num_scalar_prefetch=num_prefetch,
            grid=grid,
            in_specs=in_specs,
            out_specs=out_spec,
        ),
        compiler_params=pltpu.CompilerParams(
            dimension_semantics=("parallel",),
            vmem_limit_bytes=32 * 1024 * 1024,   # explicit: covers v5e's 16 MiB default
        ),
        cost_estimate=cost,
    )(*call_args)

    # TODO(synk): dropout is identity here (inference mode); training-mode dropout
    # would fuse pltpu.prng_seed + pltpu.stateful_bernoulli into this kernel.
    return out2.reshape(S, B, D)


if __name__ == "__main__":
    seq_len, batch, dim = 8, 2, 32

    key = jax.random.PRNGKey(0)
    emb = jax.random.normal(key, (seq_len, batch, dim), dtype=jnp.float32)
    pe_table = _build_pe_table(dim, max_len=5000)

    # step=None path
    out = positional_encoding(emb, pe_table, dim, step=None)
    out = jax.block_until_ready(out)
    ref = emb * math.sqrt(dim) + pe_table[:seq_len][:, None, :]
    assert out.shape == (seq_len, batch, dim)
    assert jnp.allclose(out, ref, atol=1e-5, rtol=1e-5)

    # stepwise decode path (seq_len = 1, encoding for position `step`)
    step = 7
    emb1 = jax.random.normal(jax.random.PRNGKey(1), (1, batch, dim), dtype=jnp.float32)
    out1 = jax.block_until_ready(positional_encoding(emb1, pe_table, dim, step=step))
    ref1 = emb1 * math.sqrt(dim) + pe_table[step][None, None, :]
    assert jnp.allclose(out1, ref1, atol=1e-5, rtol=1e-5)

    print("KERNEL_OK")
</pallas_src>

<mosaic_0001>
module attributes {stable_mosaic.version = 11 : i64} {
  func.func @_pos_enc_kernel(%arg0: i32, %arg1: memref<8x64xf32, #tpu.memory_space<vmem>>, %arg2: memref<8x32xf32, #tpu.memory_space<vmem>>, %arg3: memref<8x64xf32, #tpu.memory_space<vmem>>) attributes {dimension_semantics = [#tpu.dimension_semantics<parallel>], iteration_bounds = array<i64: 1>, scalar_prefetch = 0 : i64, scratch_operands = 0 : i64, tpu.core_type = #tpu.core_type<tc>, window_params = [{transform_indices = @transform_0, window_bounds = array<i64: 8, 64>}, {transform_indices = @transform_1, window_bounds = array<i64: 8, 32>}, {transform_indices = @transform_2, window_bounds = array<i64: 8, 64>}]} {
    %c0 = arith.constant 0 : index
    %c0_0 = arith.constant 0 : index
    %0 = vector.load %arg2[%c0, %c0_0] : memref<8x32xf32, #tpu.memory_space<vmem>>, vector<8x32xf32>
    %c0_1 = arith.constant 0 : index
    %c0_2 = arith.constant 0 : index
    %1 = vector.load %arg1[%c0_1, %c0_2] : memref<8x64xf32, #tpu.memory_space<vmem>>, vector<8x32xf32>
    %cst = arith.constant 5.65685415 : f32
    %2 = vector.broadcast %cst : f32 to vector<8x32xf32>
    %3 = arith.mulf %1, %2 : vector<8x32xf32>
    %4 = arith.addf %3, %0 : vector<8x32xf32>
    %c0_3 = arith.constant 0 : index
    %c0_4 = arith.constant 0 : index
    %5 = vector.load %arg3[%c0_3, %c0_4] : memref<8x64xf32, #tpu.memory_space<vmem>>, vector<8x32xf32>
    tpu.vector_store %arg3[%c0_3, %c0_4], %4 {strides = array<i32>} : memref<8x64xf32, #tpu.memory_space<vmem>>, vector<8x32xf32>,
    %c0_5 = arith.constant 0 : index
    %c32 = arith.constant 32 : index
    %6 = vector.load %arg1[%c0_5, %c32] : memref<8x64xf32, #tpu.memory_space<vmem>>, vector<8x32xf32>
    %cst_6 = arith.constant 5.65685415 : f32
    %7 = vector.broadcast %cst_6 : f32 to vector<8x32xf32>
    %8 = arith.mulf %6, %7 : vector<8x32xf32>
    %9 = arith.addf %8, %0 : vector<8x32xf32>
    %c0_7 = arith.constant 0 : index
    %c32_8 = arith.constant 32 : index
    %10 = vector.load %arg3[%c0_7, %c32_8] : memref<8x64xf32, #tpu.memory_space<vmem>>, vector<8x32xf32>
    tpu.vector_store %arg3[%c0_7, %c32_8], %9 {strides = array<i32>} : memref<8x64xf32, #tpu.memory_space<vmem>>, vector<8x32xf32>,
    return
  }
  func.func @transform_0(%arg0: i32) -> (i32, i32) {
    %c0_i32 = arith.constant 0 : i32
    %c0_i32_0 = arith.constant 0 : i32
    return %arg0, %c0_i32 : i32, i32
  }
  func.func @transform_1(%arg0: i32) -> (i32, i32) {
    %c0_i32 = arith.constant 0 : i32
    %c0_i32_0 = arith.constant 0 : i32
    return %arg0, %c0_i32 : i32, i32
  }
  func.func @transform_2(%arg0: i32) -> (i32, i32) {
    %c0_i32 = arith.constant 0 : i32
    %c0_i32_0 = arith.constant 0 : i32
    return %arg0, %c0_i32 : i32, i32
  }
}

</mosaic_0001>

<bundles_post_ra>
// kernel: tpu_custom_call.1
= control target key start
LH: loop header
LB: loop body
LE: loop exit
PB: predicated region body
PF: predicated region fallthrough
CT: control target
= control target key end

     0   :  { %s91_s0 = inlined_call_operand.vmem [shape: f32[8,64], index: 0, kind: input, shape index: {}]   ;;  %s92_s1 = inlined_call_operand.vmem [shape: f32[5000,32], index: 1, kind: input, shape index: {}]   ;;  %s93_s2 = inlined_call_operand.hbm [shape: f32[8,64], index: 2, kind: output, shape index: {}]  }
   0x1   :  { %v12_v0 = vld [vmem:[%s92_s1] sm:$0xff] }
   0x2   :  { %v13_v1 = vld [vmem:[%s91_s0] sm:$0xff] }
   0x3   :  { %7 = vsyncpa [#allocation3], 0  ;;  %v14_v2 = vmul.f32 5.656854, %v13_v1  ;;  %s65_s13 = smov 32   ;;  %vm16_vm0 = vcmask 261120  }
   0x4   :  { %21 = vrot.lane.b32.xlu0 %v12_v0, %s65_s13  ;;  %s66_s14 = smov [#allocation2]   ;;  %vm25_vm1 = vcmask 523520  }
   0x5   :  { %v15_v3 = vadd.f32 %v14_v2, %v12_v0  ;;  %s33_s15 = sshll.u32 %s66_s14, 4  ;;  %s34_s15 = int_to_ptr.vmem [resolvable:$true] %s33_s15 }
   0x6   :  { %s43_s16 = scalar_lea.vmem %s34_s15, 128  ;;  %p48_p1 = scmp.lt.s32.totalorder %s34_s15, %s34_s15 }
   0x7   :  { %17 = vst.msk [vmem:[#allocation2] sm:$0xff] %vm16_vm0, %v15_v3  ;;  %p44_p0 = scmp.ne.s32.totalorder %s34_s15, %s43_s16  ;;  %p49_p2 = scmp.lt.s32.totalorder %s43_s16, %s43_s16 }
   0x9   :  { %p50_p3 = por %p49_p2, %p48_p1 }
   0xb   :  { %p51_p4 = pnand %p50_p3, %p44_p0 }
  0x76   :  { %v22_v4 = vpop.permute.xlu0 %21 }
  0x77   :  { %v24_v5 = vadd.f32 %v22_v4, %v14_v2 }
  0x79   :  { %26 = vst.msk [vmem:[#allocation2] sm:$0xff] %vm25_vm1, %v24_v5 }
  0x7a   :  { %54 = shalt.err (!%p51_p4)
}
  0x7b   :  { %36 = dma.vmem_to_hbm [thread:$0]  %s34_s15, 128, %s93_s2, [#allocation3]  }
  0x7c   :  { %63 = dma.done.wait [#allocation3], 128  }
  0x7d   :  { %64 = vsyncadd [#allocation3], 4294967168 }
  0x7e   :  { %40 = vsyncpa [#allocation3], 1 }

</bundles_post_ra>
